<compile_context>
chip_gen: v6e
topology: v6e:2x2x1
jax: 0.10.0
libtpu: 0.0.40
codegen_flags: <defaults>
</compile_context>

<pallas_src>
import functools
import math

import jax
import jax.numpy as jnp
from jax.experimental import pallas as pl
from jax.experimental.pallas import tpu as pltpu


# ---------------------------------------------------------------------------
# Sinusoidal table (plain JAX glue, matches the PyTorch buffer).
# ---------------------------------------------------------------------------
def make_positional_encoding(max_seq_length: int, d_model: int) -> jnp.ndarray:
    position = jnp.arange(max_seq_length, dtype=jnp.float32)[:, None]          # (L, 1)
    div_term = jnp.exp(
        jnp.arange(0, d_model, 2, dtype=jnp.float32) * -(math.log(10000.0) / d_model)
    )                                                                           # (D/2,)
    sin = jnp.sin(position * div_term)
    cos = jnp.cos(position * div_term)
    # Interleave: pe[:, 0::2] = sin, pe[:, 1::2] = cos
    pe = jnp.stack([sin, cos], axis=-1).reshape(max_seq_length, d_model)
    return pe.astype(jnp.float32)


# ---------------------------------------------------------------------------
# Small planning helpers
# ---------------------------------------------------------------------------
def _sublane_multiple(dtype):
    """Rows per sublane tile: 8 for 4-byte, 16 for 2-byte, 32 for 1-byte dtypes."""
    return {4: 8, 2: 16, 1: 32}.get(jnp.dtype(dtype).itemsize, 8)


def _vmem_config():
    """(tile budget bytes, vmem_limit_bytes or None) for the local TPU generation."""
    try:
        phys = int(getattr(pltpu.get_tpu_info(), "vmem_capacity_bytes"))
    except Exception:
        # Unknown generation: stay under every default scoped-VMEM limit
        # (v5e's default is only 16 MiB) and leave the compiler limit alone.
        return 12 << 20, None
    if phys <= (64 << 20):
        # v7x-class: 64 MiB physical VMEM -> conservative tiles, default limit.
        return 20 << 20, 32 << 20
    # v5e / v6e: 128 MiB physical VMEM -> bigger tiles + raised scoped limit.
    return 48 << 20, 64 << 20


def _largest_divisor_leq(n, cap, multiple_of=1):
    """Largest d with d | n, d <= cap, d % multiple_of == 0 (0 if none)."""
    best, d = 0, 1
    while d * d <= n:
        if n % d == 0:
            for c in (d, n // d):
                if c <= cap and c % multiple_of == 0 and c > best:
                    best = c
        d += 1
    return best


def _best_row_tile(B, S, sub, rows_cap, min_steps=4):
    """Largest legal row tile for the flattened (B*S, D) view.

    Legal tiles are multiples of `sub` that either divide S (subdivide one
    sequence) or equal k*S with k | B (span whole sequences).  Prefer tiles
    leaving at least `min_steps` grid steps (v7x megacore), then >= 2, then any.
    """
    N = B * S

    def best_under(cap):
        best = _largest_divisor_leq(S, cap, multiple_of=sub)
        if cap >= S:
            k = _largest_divisor_leq(B, cap // S)
            if k:
                best = max(best, k * S)
        return best

    for steps in (min_steps, 2, 1):
        cap = min(rows_cap, N // steps) if steps > 1 else rows_cap
        if cap >= sub:
            ts = best_under(cap)
            if ts:
                return ts
    return sub  # unreachable when sub | S; safe default otherwise


# ---------------------------------------------------------------------------
# Kernel bodies
# ---------------------------------------------------------------------------
def _mix_seed(seed, step):
    # Non-linear (xor + odd-constant multiply) mix so nearby (seed, step) pairs
    # get well-separated PRNG streams.  int32 wraparound is intentional.
    return ((seed ^ (step * jnp.int32(374761393))) * jnp.int32(668265263)) ^ step


def _apply_dropout(y, raw_bits, *, threshold, scale):
    # Inverted dropout via an integer-threshold compare on 31 random bits:
    # keep with probability (1 - p), scale kept values by 1/(1 - p).
    # (Realized drop probability is round(p * 2^31) / 2^31.)
    mask31 = jnp.asarray(0x7FFFFFFF, dtype=raw_bits.dtype)
    keep = (raw_bits & mask31) >= jnp.asarray(threshold, dtype=raw_bits.dtype)
    return jnp.where(keep, y * jnp.asarray(scale, dtype=y.dtype), jnp.zeros_like(y))


def _rows_add(x, pe_ref, *, ts, seq):
    """(ts, D) row tile + the matching slice of the VMEM-resident pe table."""
    if ts == seq:                      # tile == one pe block: same-shape add
        return x + pe_ref[...]
    if ts < seq:                       # ts | seq: modular in-VMEM slice
        n_blocks = seq // ts
        off = pl.multiple_of((pl.program_id(0) % n_blocks) * ts, ts)
        return x + pe_ref[pl.ds(off, ts), :]
    # ts == k * seq: tile spans k whole sequences; broadcast-add per sequence
    # (seq is sublane-aligned here, so the reshapes are layout no-ops).
    k = ts // seq
    d = x.shape[-1]
    return (x.reshape(k, seq, d) + pe_ref[...]).reshape(ts, d)


def _rows_add_kernel(x_ref, pe_ref, o_ref, *, ts, seq):
    o_ref[...] = _rows_add(x_ref[...], pe_ref, ts=ts, seq=seq).astype(o_ref.dtype)


def _rows_add_drop_prng_kernel(seed_ref, x_ref, pe_ref, o_ref, *, ts, seq,
                               threshold, scale):
    pltpu.prng_seed(_mix_seed(seed_ref[0], pl.program_id(0)))
    y = _rows_add(x_ref[...], pe_ref, ts=ts, seq=seq)
    o_ref[...] = _apply_dropout(y, pltpu.prng_random_bits(y.shape),
                                threshold=threshold, scale=scale).astype(o_ref.dtype)


def _rows_add_drop_bits_kernel(x_ref, pe_ref, bits_ref, o_ref, *, ts, seq,
                               threshold, scale):
    y = _rows_add(x_ref[...], pe_ref, ts=ts, seq=seq)
    o_ref[...] = _apply_dropout(y, bits_ref[...],
                                threshold=threshold, scale=scale).astype(o_ref.dtype)


def _batch_add_kernel(x_ref, pe_ref, o_ref):
    # (kb, S, D) + (S, D): broadcast over the batch tile; pe is VMEM-resident.
    o_ref[...] = (x_ref[...] + pe_ref[...]).astype(o_ref.dtype)


def _batch_add_drop_prng_kernel(seed_ref, x_ref, pe_ref, o_ref, *, threshold, scale):
    pltpu.prng_seed(_mix_seed(seed_ref[0], pl.program_id(0)))
    y = x_ref[...] + pe_ref[...]
    o_ref[...] = _apply_dropout(y, pltpu.prng_random_bits(y.shape),
                                threshold=threshold, scale=scale).astype(o_ref.dtype)


def _batch_add_drop_bits_kernel(x_ref, pe_ref, bits_ref, o_ref, *, threshold, scale):
    y = x_ref[...] + pe_ref[...]
    o_ref[...] = _apply_dropout(y, bits_ref[...],
                                threshold=threshold, scale=scale).astype(o_ref.dtype)


# ---------------------------------------------------------------------------
# Wrapper
# ---------------------------------------------------------------------------
def positional_encoding_forward(x, pe, *, p=0.1, training=False, seed=0,
                                use_hw_prng=None, donate_input=False):
    """x: (B, S, D); pe: (max_seq_length, D).  Returns dropout(x + pe[:S])."""
    B, S, D = x.shape
    # Match torch type promotion (e.g. bf16 x + f32 pe buffer -> f32 output).
    out_dtype = jnp.promote_types(x.dtype, pe.dtype)
    pe_slice = pe[:S].astype(out_dtype)

    apply_dropout = bool(training) and p > 0.0
    if apply_dropout and p >= 1.0:
        return jnp.zeros(x.shape, out_dtype)      # torch.nn.Dropout(p=1.0) drops all

    if use_hw_prng is None:
        # On TPU always use the on-chip PRNG: streaming a random-bits tensor
        # would roughly double HBM traffic for this bandwidth-bound op.  The
        # bits path only exists for non-TPU backends (interpret/CPU).
        use_hw_prng = jax.default_backend() == "tpu"
    stream_bits = apply_dropout and not use_hw_prng

    scale = 1.0 / (1.0 - p) if apply_dropout else 1.0
    threshold = min(int(round(p * 2147483648.0)), 2147483647)

    itemsize = max(jnp.dtype(x.dtype).itemsize, jnp.dtype(out_dtype).itemsize)
    sub = max(_sublane_multiple(x.dtype), _sublane_multiple(out_dtype))
    budget, vmem_limit = _vmem_config()
    n_streams = 2 + (1 if stream_bits else 0)     # x-in + out (+ bits)
    row_bytes = D * itemsize
    N = B * S

    cp_kwargs = dict(dimension_semantics=("parallel",))
    if vmem_limit is not None:
        cp_kwargs["vmem_limit_bytes"] = int(vmem_limit)
    cparams = pltpu.CompilerParams(**cp_kwargs)

    seed_arr = jnp.asarray([seed], dtype=jnp.int32)

    if S % sub == 0:
        # ---------------- rows mode: flattened (B*S, D) 2-D tiles ----------------
        pe_buf_bytes = 2 * S * row_bytes          # conservatively double-buffered
        pe_resident = pe_buf_bytes <= budget // 2
        if pe_resident:
            per_stream = max((budget - pe_buf_bytes) // (2 * n_streams),
                             sub * row_bytes)
        else:                                     # pe streamed like x/out
            per_stream = max(budget // (2 * (n_streams + 1)), sub * row_bytes)
        rows_cap = max(sub, per_stream // row_bytes)
        ts = _best_row_tile(B, S, sub, rows_cap, min_steps=4)
        grid = (N // ts,)

        x2 = x.reshape(N, D)
        x_spec = pl.BlockSpec((ts, D), lambda i, *_: (i, 0))
        o_spec = pl.BlockSpec((ts, D), lambda i, *_: (i, 0))
        if pe_resident:
            # Constant block index -> pe is DMA'd into VMEM once and reused.
            pe_spec = pl.BlockSpec((S, D), lambda i, *_: (0, 0))
            seq_static = S
        else:
            # pe table too large to keep resident: stream matching (ts, D) tiles
            # (ts | S here, so the modular block index lines up with the rows).
            n_pe = S // ts
            pe_spec = pl.BlockSpec((ts, D), lambda i, *_: (i % n_pe, 0))
            seq_static = ts                       # kernel does a same-shape add
        out_shape = jax.ShapeDtypeStruct((N, D), out_dtype)

        if not apply_dropout:
            aliases = {0: 0} if (donate_input and x.dtype == out_dtype) else {}
            out2 = pl.pallas_call(
                functools.partial(_rows_add_kernel, ts=ts, seq=seq_static),
                out_shape=out_shape,
                grid=grid,
                in_specs=[x_spec, pe_spec],
                out_specs=o_spec,
                compiler_params=cparams,
                input_output_aliases=aliases,
            )(x2, pe_slice)
        elif use_hw_prng:
            out2 = pl.pallas_call(
                functools.partial(_rows_add_drop_prng_kernel, ts=ts, seq=seq_static,
                                  threshold=threshold, scale=scale),
                out_shape=out_shape,
                grid_spec=pltpu.PrefetchScalarGridSpec(
                    num_scalar_prefetch=1,
                    grid=grid,
                    in_specs=[x_spec, pe_spec],
                    out_specs=o_spec),
                compiler_params=cparams,
            )(seed_arr, x2, pe_slice)
        else:
            bits = jax.lax.bitcast_convert_type(
                jax.random.bits(jax.random.PRNGKey(seed), (N, D), dtype=jnp.uint32),
                jnp.int32)
            out2 = pl.pallas_call(
                functools.partial(_rows_add_drop_bits_kernel, ts=ts, seq=seq_static,
                                  threshold=threshold, scale=scale),
                out_shape=out_shape,
                grid=grid,
                in_specs=[x_spec, pe_spec, x_spec],
                out_specs=o_spec,
                compiler_params=cparams,
            )(x2, pe_slice, bits)
        return out2.reshape(B, S, D)

    # -------- batch mode (S not sublane-aligned): (kb, S, D) blocks --------
    # Trailing block dims equal the full array dims, so this tiling is legal
    # for any S; pe stays resident as a constant (S, D) block and is broadcast
    # over the batch tile inside the kernel.
    seq_bytes = S * row_bytes
    per_stream = max((budget - 2 * seq_bytes) // (2 * n_streams), seq_bytes)
    kb_cap = max(1, per_stream // seq_bytes)
    kb_cap = min(kb_cap, max(1, B // min(4, B)))  # keep >=~4 grid steps for v7x
    kb = _largest_divisor_leq(B, kb_cap) or 1
    grid = (B // kb,)

    x_spec = pl.BlockSpec((kb, S, D), lambda b, *_: (b, 0, 0))
    o_spec = pl.BlockSpec((kb, S, D), lambda b, *_: (b, 0, 0))
    pe_spec = pl.BlockSpec((S, D), lambda b, *_: (0, 0))
    out_shape = jax.ShapeDtypeStruct((B, S, D), out_dtype)

    if not apply_dropout:
        aliases = {0: 0} if (donate_input and x.dtype == out_dtype) else {}
        return pl.pallas_call(
            _batch_add_kernel,
            out_shape=out_shape, grid=grid,
            in_specs=[x_spec, pe_spec], out_specs=o_spec,
            compiler_params=cparams, input_output_aliases=aliases,
        )(x, pe_slice)
    if use_hw_prng:
        return pl.pallas_call(
            functools.partial(_batch_add_drop_prng_kernel,
                              threshold=threshold, scale=scale),
            out_shape=out_shape,
            grid_spec=pltpu.PrefetchScalarGridSpec(
                num_scalar_prefetch=1, grid=grid,
                in_specs=[x_spec, pe_spec], out_specs=o_spec),
            compiler_params=cparams,
        )(seed_arr, x, pe_slice)
    bits = jax.lax.bitcast_convert_type(
        jax.random.bits(jax.random.PRNGKey(seed), (B, S, D), dtype=jnp.uint32),
        jnp.int32)
    return pl.pallas_call(
        functools.partial(_batch_add_drop_bits_kernel,
                          threshold=threshold, scale=scale),
        out_shape=out_shape, grid=grid,
        in_specs=[x_spec, pe_spec, x_spec], out_specs=o_spec,
        compiler_params=cparams,
    )(x, pe_slice, bits)


# ---------------------------------------------------------------------------
# Main
# ---------------------------------------------------------------------------
if __name__ == "__main__":
    d_model = 128
    max_seq_length = 64
    batch, seq = 2, 8
    p = 0.1

    key = jax.random.PRNGKey(0)
    x = jax.random.normal(key, (batch, seq, d_model), dtype=jnp.float32)
    pe = make_positional_encoding(max_seq_length, d_model)

    # Eval mode: dropout is identity -> deterministic reference check.
    out_eval = jax.block_until_ready(
        positional_encoding_forward(x, pe, p=p, training=False))
    ref = x + pe[:seq][None, :, :]
    assert out_eval.shape == x.shape and out_eval.dtype == x.dtype
    assert jnp.allclose(out_eval, ref, atol=1e-6), "eval-mode mismatch"

    # Training mode: add + inverted dropout (on-chip PRNG on TPU).
    out_train = jax.block_until_ready(
        positional_encoding_forward(x, pe, p=p, training=True, seed=0))
    assert out_train.shape == x.shape
    scale = 1.0 / (1.0 - p)
    kept_ok = jnp.isclose(out_train, ref * scale, atol=1e-5)
    dropped = out_train == 0.0
    assert bool(jnp.all(kept_ok | dropped)), "training-mode values mismatch"
    frac_dropped = float(jnp.mean(dropped.astype(jnp.float32)))
    assert 0.0 < frac_dropped < 0.5, f"implausible dropout fraction {frac_dropped}"

    print("KERNEL_OK")
</pallas_src>

<mosaic_0001>
module attributes {stable_mosaic.version = 11 : i64} {
  func.func @_rows_add_kernel(%arg0: i32, %arg1: memref<8x128xf32, #tpu.memory_space<vmem>>, %arg2: memref<8x128xf32, #tpu.memory_space<vmem>>, %arg3: memref<8x128xf32, #tpu.memory_space<vmem>>) attributes {dimension_semantics = [#tpu.dimension_semantics<parallel>], iteration_bounds = array<i64: 2>, scalar_prefetch = 0 : i64, scratch_operands = 0 : i64, tpu.core_type = #tpu.core_type<tc>, window_params = [{transform_indices = @transform_0, window_bounds = array<i64: 8, 128>}, {pipeline_mode = #tpu.pipeline_mode<synchronous>, transform_indices = @transform_1, window_bounds = array<i64: 8, 128>}, {transform_indices = @transform_2, window_bounds = array<i64: 8, 128>}]} {
    %c0 = arith.constant 0 : index
    %c0_0 = arith.constant 0 : index
    %0 = vector.load %arg1[%c0, %c0_0] : memref<8x128xf32, #tpu.memory_space<vmem>>, vector<8x128xf32>
    %c0_1 = arith.constant 0 : index
    %c0_2 = arith.constant 0 : index
    %1 = vector.load %arg2[%c0_1, %c0_2] : memref<8x128xf32, #tpu.memory_space<vmem>>, vector<8x128xf32>
    %2 = arith.addf %0, %1 : vector<8x128xf32>
    %c0_3 = arith.constant 0 : index
    %c0_4 = arith.constant 0 : index
    %3 = vector.load %arg3[%c0_3, %c0_4] : memref<8x128xf32, #tpu.memory_space<vmem>>, vector<8x128xf32>
    tpu.vector_store %arg3[%c0_3, %c0_4], %2 {strides = array<i32>} : memref<8x128xf32, #tpu.memory_space<vmem>>, vector<8x128xf32>,
    return
  }
  func.func @transform_0(%arg0: i32) -> (i32, i32) {
    %c0_i32 = arith.constant 0 : i32
    %c0_i32_0 = arith.constant 0 : i32
    return %arg0, %c0_i32 : i32, i32
  }
  func.func @transform_1(%arg0: i32) -> (i32, i32) {
    %c0_i32 = arith.constant 0 : i32
    %c0_i32_0 = arith.constant 0 : i32
    %c0_i32_1 = arith.constant 0 : i32
    return %c0_i32, %c0_i32_0 : i32, i32
  }
  func.func @transform_2(%arg0: i32) -> (i32, i32) {
    %c0_i32 = arith.constant 0 : i32
    %c0_i32_0 = arith.constant 0 : i32
    return %arg0, %c0_i32 : i32, i32
  }
}

</mosaic_0001>

<bundles_post_ra>
// kernel: tpu_custom_call.1
= control target key start
LH: loop header
LB: loop body
LE: loop exit
PB: predicated region body
PF: predicated region fallthrough
CT: control target
= control target key end

     0   :  { %7 = vsyncpa [#allocation3], 0  ;;  %s649_s0 = inlined_call_operand.hbm [shape: f32[16,128], index: 0, kind: input, shape index: {}]   ;;  %s650_s1 = inlined_call_operand.hbm [shape: f32[8,128], index: 1, kind: input, shape index: {}]   ;;  %s651_s2 = inlined_call_operand.hbm [shape: f32[16,128], index: 2, kind: output, shape index: {}]  }
   0x1   :  { %9 = vsyncpa [#allocation3 + $0x1], 0 }
   0x2   :  { %10 = vsyncpa [#allocation6], 0 }
   0x3   :  { %11 = vsyncpa [#allocation4], 0 }
   0x4   :  { %13 = vsyncpa [#allocation4 + $0x1], 0  ;;  %s483_s9 = smov 0   ;;  %s485_s10 = smov 0  }
   0x5   :  { %s487_s11 = smov 0   ;;  %s489_s12 = smov 0  }
   0x6 LB: > { %s504_s13 = sadd.s32 4294967295, %s463_s12   ;;  %s270_s14 = sadd.s32 4294967294, %s463_s12   ;;  %s463_s12 = sphi %s489_s12, %s674_s12   ;;  %s459_s11 = sphi %s487_s11, %s673_s11   ;;  %s455_s10 = sphi %s485_s10, %s672_s10   ;;  %s451_s9 = sphi %s483_s9, %s671_s9  }
   0x7   : > { %p39_p0 = scmp.ne.s32.totalorder %s455_s10, %s451_s9  ;;  %p652_p1 = scmp.eq.s32.totalorder %s504_s13, 0 }
   0x8   : > { %p90_p3 = scmp.eq.s32.totalorder %s270_s14, 1  ;;  %p271_p5 = scmp.ge.s32.totalorder %s463_s12, 1 }
   0x9   : > { %p513_p4 = por %p652_p1, %p39_p0  ;;  %p97_p7 = scmp.lt.s32.totalorder %s463_s12, 3 }
   0xa   : > { %p518_p6 = por %p90_p3, %p39_p0  ;;  %s465_s18 = smov [#allocation5]  }
   0xb   : > { %s656_s15 = scalar_select %p513_p4, 1, 0 }
   0xc   : > { %s657_s16 = scalar_select %p518_p6, 1, 0 }
   0xd   : > { %p523_p8 = pnand %p271_p5, %p97_p7  ;;  %s110_s19 = sshll.u32 %s465_s18, 4  ;;  %s111_s19 = int_to_ptr.vmem [resolvable:$true] %s110_s19 }
   0xe   : > { %s531_s20 = sadd.s32 1, %s463_s12   ;;  %s26_s24 = sadd.s32 1, %s459_s11 }
   0xf   : > { %s658_s17 = scalar_select %p523_p8, 1, 0 }
  0x10   : > { %p292_p10 = pneg %p523_p8  ;;  %s23_s22 = ssub.s32 %s463_s12, %s531_s20 }
  0x11   : > { %p541_p12 = scmp.eq.s32.totalorder %s23_s22, 0  ;;  %p33_p13 = scmp.ne.s32.totalorder %s459_s11, %s455_s10 }
  0x12   : > { %p535_p11 = pnand %p292_p10, %p652_p1  ;;  %s352_s25 = scalar_lea.vmem %s111_s19, 128 }
  0x13   : > { %p353_p3 = scmp.ne.s32.totalorder %s111_s19, %s352_s25  ;;  %p360_p9 = scmp.lt.s32.totalorder %s111_s19, %s111_s19 }
  0x14   : > { %p343_p0 = pneg %p535_p11  ;;  %p361_p2 = scmp.lt.s32.totalorder %s352_s25, %s352_s25 }
  0x16   : > { %p355_p5 = pnand %p353_p3, %p343_p0  ;;  %p362_p10 = por %p361_p2, %p360_p9 }
  0x18   : > { %p356_p7 = pneg %p355_p5 }
  0x1a   : > { %p363_p1 = pnand %p362_p10, %p356_p7 }
  0x1c   : > { %366 = shalt.err (!%p363_p1)
}
  0x1d   : > { %295 = dma.hbm_to_vmem [thread:$0]  (!%p535_p11), %s650_s1, 128, %s111_s19, [#allocation6]  }
  0x1e   : > { %s558_s28 = scalar_select %p541_p12, %s459_s11, %s26_s24  }
  0x1f   : > { %p34_p1 = scmp.eq.s32.totalorder %s463_s12, 0  ;;  %p661_p2 = scmp.eq.s32.totalorder %s504_s13, 1 }
  0x20   : > { %p305_p0 = scmp.lt.s32.totalorder %s463_s12, 2  ;;  %s121_s30 = sand.u32 1, %s459_s11  }
  0x21   : > { %p566_p9 = por %p661_p2, %p33_p13  ;;  %p35_p3 = por %p34_p1, %p33_p13 }
  0x22   : > { %s274_s3 = sshll.u32 %s121_s30, 3  ;;  %s275_s4 = sshll.u32 %s463_s12, 7 }
  0x23   : > { %s662_s29 = scalar_select %p566_p9, 1, 0 }
  0x24   : > { %s579_s7 = scalar_lea.hbm %s649_s0, %s275_s4  ;;  %s125_s8 = scalar_lea.vmem [#allocation2], %s274_s3 }
  0x25   : > { %s132_s14 = sshll.u32 %s125_s8, 4  ;;  %p581_p11 = pnand %p305_p0, %p35_p3  ;;  %s133_s14 = int_to_ptr.vmem [resolvable:$true] %s132_s14 }
  0x26   : > { %s122_s19 = scalar_lea.sflag [#allocation3], %s121_s30  ;;  %s367_s21 = scalar_lea.hbm %s579_s7, 128 }
  0x27   : > { %p368_p12 = scmp.ne.s32.totalorder %s579_s7, %s367_s21  ;;  %p369_p13 = pneg %p581_p11 }
  0x28   : > { %s372_s24 = scalar_lea.hbm %s649_s0, 256  ;;  %p373_p10 = scmp.lt.s32.totalorder %s579_s7, %s649_s0 }
  0x29   : > { %p370_p5 = pnand %p369_p13, %p368_p12  ;;  %p374_p1 = scmp.lt.s32.totalorder %s372_s24, %s367_s21 }
  0x2b   : > { %p371_p7 = pneg %p370_p5  ;;  %p375_p2 = por %p374_p1, %p373_p10 }
  0x2d   : > { %p376_p0 = pnand %p375_p2, %p371_p7 }
  0x2f   : > { %379 = shalt.err (!%p376_p0)
}
  0x30   : > { %s380_s27 = scalar_lea.vmem %s133_s14, 128  ;;  %s466_s30 = smov [#allocation2]  }
  0x31   : > { %p381_p3 = scmp.ne.s32.totalorder %s133_s14, %s380_s27  ;;  %s385_s3 = sshll.u32 %s466_s30, 4  ;;  %s386_s3 = int_to_ptr.vmem [resolvable:$false] %s385_s3 }
  0x32   : > { %s387_s4 = scalar_lea.vmem %s386_s3, 256  ;;  %p388_p12 = scmp.lt.s32.totalorder %s133_s14, %s386_s3 }
  0x33   : > { %p383_p6 = pnand %p381_p3, %p369_p13  ;;  %p389_p5 = scmp.lt.s32.totalorder %s387_s4, %s380_s27 }
  0x35   : > { %p384_p9 = pneg %p383_p6  ;;  %p390_p4 = por %p389_p5, %p388_p12 }
  0x37   : > { %p391_p8 = pnand %p390_p4, %p384_p9 }
  0x39   : > { %394 = shalt.err (!%p391_p8)
}
  0x3a   : > { %299 = dma.hbm_to_vmem [thread:$0]  (!%p581_p11), %s579_s7, 128, %s133_s14, %s122_s19  }
  0x3b   : > { %p664_p7 = scmp.ne.s32.totalorder %s658_s17, 0 }
  0x3c   : > { %s602_s5 = sand.u32 (!%p664_p7), 1, %s455_s10   ;;  %p665_p6 = scmp.ne.s32.totalorder (!%p664_p7), %s656_s15, 0 }
  0x3d   : > { %141 = sbr.rel (%p664_p7) target bundleno = 95 (0x5f), region = 28  ;;  %s277_s6 = sshll.u32 (!%p664_p7), %s602_s5, 3 }
  0x3e   : > { %s144_s8 = scalar_lea.sflag (!%p664_p7), [#allocation3], %s602_s5  ;;  %s147_s21 = scalar_lea.vmem (!%p664_p7), [#allocation2], %s277_s6 }
  0x42   : > { %438 = dma.done.wait (%p665_p6), %s144_s8, 128  }
  0x43   : > { %440 = vsyncadd (%p665_p6), %s144_s8, 4294967168  ;;  %p666_p4 = scmp.eq.s32.totalorder %s504_s13, 0 }
  0x45   : > { %442 = dma.done.wait (%p666_p4), [#allocation6], 128   ;;  %p667_p8 = pmov %p666_p4 }
  0x46   : > { %s171_s17 = scalar_lea.vmem [#allocation7], %s277_s6  ;;  %s281_s14 = sshll.u32 %s504_s13, 7  ;;  %v172_v0 = vld [vmem:[%s147_s21] sm:$0xff]  ;;  %v173_v1 = vld [vmem:[#allocation5] sm:$0xff] }
  0x47   : > { %444 = vsyncadd (%p667_p8), [#allocation6], 4294967168  ;;  %s190_s7 = sshll.u32 %s171_s17, 4  ;;  %v174_v2 = vadd.f32 %v173_v1, %v172_v0  ;;  %s188_s15 = scalar_lea.hbm %s651_s2, %s281_s14  ;;  %s191_s7 = int_to_ptr.vmem [resolvable:$true] %s190_s7 }
  0x48   : > { %s177_s22 = scalar_lea.sflag [#allocation4], %s602_s5  ;;  %s395_s23 = scalar_lea.vmem %s191_s7, 128 }
  0x49   : > { %175 = vst [vmem:[%s171_s17] sm:$0xff] %v174_v2  ;;  %p396_p9 = scmp.ne.s32.totalorder %s191_s7, %s395_s23  ;;  %p668_p11 = scmp.ne.s32.totalorder %s662_s29, 0 }
  0x4a   : > { %s467_s24 = smov [#allocation7]  }
  0x4b   : > { %p397_p13 = pnand %p396_p9, %p668_p11  ;;  %s399_s25 = sshll.u32 %s467_s24, 4  ;;  %s400_s25 = int_to_ptr.vmem [resolvable:$false] %s399_s25 }
  0x4c   : > { %s401_s26 = scalar_lea.vmem %s400_s25, 256  ;;  %p402_p1 = scmp.lt.s32.totalorder %s191_s7, %s400_s25 }
  0x4d   : > { %p398_p10 = pneg %p397_p13  ;;  %p403_p2 = scmp.lt.s32.totalorder %s401_s26, %s395_s23 }
  0x4f   : > { %p404_p0 = por %p403_p2, %p402_p1 }
  0x51   : > { %p405_p3 = pnand %p404_p0, %p398_p10 }
  0x53   : > { %408 = shalt.err (!%p405_p3)
}
  0x54   : > { %s409_s13 = scalar_lea.hbm %s188_s15, 128  ;;  %s413_s3 = scalar_lea.hbm %s651_s2, 256 }
  0x55   : > { %p410_p12 = scmp.ne.s32.totalorder %s188_s15, %s409_s13  ;;  %p414_p6 = scmp.lt.s32.totalorder %s188_s15, %s651_s2 }
  0x56   : > { %p415_p4 = scmp.lt.s32.totalorder %s413_s3, %s409_s13 }
  0x57   : > { %p411_p5 = pnand %p410_p12, %p668_p11 }
  0x58   : > { %p416_p8 = por %p415_p4, %p414_p6 }
  0x59   : > { %p412_p7 = pneg %p411_p5 }
  0x5b   : > { %p417_p9 = pnand %p416_p8, %p412_p7 }
  0x5d   : > { %420 = shalt.err (!%p417_p9)
}
  0x5e   : > { %290 = dma.vmem_to_hbm [thread:$0]  (%p668_p11), %s191_s7, 128, %s188_s15, %s177_s22  }
  0x5f PF: > { %s202_s6 = sand.u32 1, %s451_s9   ;;  %p669_p13 = scmp.ne.s32.totalorder %s657_s16, 0 }
  0x60   : > { %p670_p10 = scmp.ge.s32.totalorder %s463_s12, 2  ;;  %s203_s8 = scalar_lea.sflag [#allocation4], %s202_s6 }
  0x62   : > { %p301_p1 = pnand %p670_p10, %p669_p13 }
  0x64   : > { %p302_p2 = pneg %p301_p1 }
  0x66   : > { %446 = dma.done.wait (%p302_p2), %s203_s8, 128  }
  0x67   : > { %448 = vsyncadd (%p302_p2), %s203_s8, 4294967168  ;;  %p16_p0 = scmp.ge.s32.totalorder %s531_s20, 4   ;;  %s671_s9 = smov %s455_s10 }
  0x68   : > { %s672_s10 = smov %s459_s11  ;;  %s673_s11 = smov %s558_s28 }
  0x69   : > { %s674_s12 = smov %s531_s20  ;;  %18 = sbr.rel (!%p16_p0) target bundleno = 6 (0x6), region = 77 }
  0x6e   :  { %208 = vsyncpa [#allocation3], 1 }
  0x6f   :  { %210 = vsyncpa [#allocation3 + $0x1], 1 }
  0x70   :  { %211 = vsyncpa [#allocation6], 1 }
  0x71   :  { %212 = vsyncpa [#allocation4], 1 }
  0x72   :  { %214 = vsyncpa [#allocation4 + $0x1], 1 }

</bundles_post_ra>
